<compile_context>
chip_gen: v5e
topology: v5e:2x2
jax: 0.10.0
libtpu: 0.0.40
codegen_flags: <defaults>
</compile_context>

<pallas_src>
import math

import jax
import jax.numpy as jnp
from jax.experimental import pallas as pl
from jax.experimental.pallas import tpu as pltpu

_LN10 = math.log(10.0)
_LANES = 128


# ----------------------------------------------------------------------------
# Kernel
# ----------------------------------------------------------------------------
def _soft_weight_kernel(bins_ref, x_ref, depth_ref, conf_ref):
    # bins_ref : SMEM (C,)            float32
    # x_ref    : VMEM (1, C, RT, 128) input dtype (f32 or bf16)
    # depth_ref: VMEM (1, 1, RT, 128) float32
    # conf_ref : VMEM (1, 1, RT, 128) input dtype
    C = x_ref.shape[1]

    # Channel max -> confidence. Exact in the native dtype (incl. bf16).
    m = x_ref[0, 0]
    for c in range(1, C):
        m = jnp.maximum(m, x_ref[0, c])
    conf_ref[...] = m[None, None].astype(conf_ref.dtype)

    # Online softmax-weighted sum over the (leading) channel axis: accumulate
    # sum_c e_c and sum_c e_c * bins[c]; the (C, tile) softmax / e / e*bins
    # tensors are never materialized.
    mf = m.astype(jnp.float32)
    denom = jnp.exp(x_ref[0, 0].astype(jnp.float32) - mf)       # (RT, 128) f32
    weighted = denom * bins_ref[0]                               # scalar from SMEM
    for c in range(1, C):
        e_c = jnp.exp(x_ref[0, c].astype(jnp.float32) - mf)
        denom = denom + e_c
        weighted = weighted + e_c * bins_ref[c]

    depth_log = weighted / denom                                 # exact division
    depth_ref[...] = jnp.exp(depth_log * _LN10)[None, None]      # 10 ** depth_log


# ----------------------------------------------------------------------------
# Tiling / VMEM budgeting
# ----------------------------------------------------------------------------
def _vmem_capacity_bytes():
    try:
        return int(pltpu.get_tpu_info().vmem_capacity_bytes)
    except Exception:
        return 64 << 20  # conservative fallback = smallest per-TC VMEM (v7x)


def _row_working_set_bytes(C, itemsize):
    """VMEM bytes per (row of 128 lanes) of a block: double-buffered in/out
    tiles PLUS the in-kernel f32 temporaries (m, e_c, denom, weighted, ...)."""
    in_row = C * _LANES * itemsize
    out_row = _LANES * (4 + itemsize)          # f32 depth + input-dtype confidence
    tmp_row = 6 * _LANES * 4                   # f32 temporaries per row
    return 2 * (in_row + out_row) + tmp_row


def _choose_row_tile(R, C, itemsize, budget_bytes, batch):
    """Pick rows-per-block rt and padded row count r_pad (multiple of rt)."""
    per_row = _row_working_set_bytes(C, itemsize)
    in_row = C * _LANES * itemsize

    # Ceiling: full working set within budget; ~512 rows (64K lanes) already
    # amortizes the ~0.35us/step overhead, so never grow beyond that.
    rt_cap = max(1, min(512, budget_bytes // per_row))
    # Target ~1 MiB of input HBM traffic per grid step.
    rt_target = max(8, min(rt_cap, -(-(1 << 20) // in_row)))

    if R <= rt_cap:
        rt = R  # single row-block; full-dim exemption covers the sublane rule
        if batch == 1 and R >= 16:
            # Keep >= 2 grid steps so both v7x TensorCores get work.
            half = (R // 2) // 8 * 8
            if half >= 8 and R % half == 0:
                rt = half
        return rt, R

    # Prefer a multiple-of-8 divisor of R (no padding, no extra HBM copy).
    best = 0
    for d in range(8, min(rt_cap, R) + 1, 8):
        if R % d == 0:
            best = d
    if best >= 8:
        return best, R

    # Otherwise pad the row count up to a multiple of the target tile.
    rt = max(8, (rt_target // 8) * 8)
    r_pad = -(-R // rt) * rt
    return rt, r_pad


# ----------------------------------------------------------------------------
# Wrapper
# ----------------------------------------------------------------------------
def soft_weight(pred_logit, depth_bins_border):
    """pred_logit: [B, C, H, W] (f32 or bf16, NCHW).

    Returns (depth [B,1,H,W] float32, confidence [B,1,H,W] pred_logit.dtype).
    """
    B, C, H, W = pred_logit.shape
    HW = H * W
    in_dtype = pred_logit.dtype
    itemsize = jnp.dtype(in_dtype).itemsize

    capacity = _vmem_capacity_bytes()
    budget = capacity // 4                     # leave headroom for Mosaic internals

    R = -(-HW // _LANES)                       # rows of 128 lanes
    rt, r_pad = _choose_row_tile(R, C, itemsize, budget, B)
    hw_pad = r_pad * _LANES

    # Lane-dense [B, C, R, 128] view.  This is a per-pixel op, so any
    # pixel->lane mapping is valid as long as inputs and outputs share it.
    # Tail pixels (if any) are zero-padded, computed, and sliced away.
    x = pred_logit.reshape(B, C, HW)
    if hw_pad != HW:
        x = jnp.pad(x, ((0, 0), (0, 0), (0, hw_pad - HW)))
    x = x.reshape(B, C, r_pad, _LANES)

    bins = jnp.asarray(depth_bins_border, dtype=jnp.float32).reshape(C)

    grid = (B, r_pad // rt)

    ws = _row_working_set_bytes(C, itemsize) * rt + (256 << 10)
    vmem_limit = int(min(0.7 * capacity, max(1.5 * ws, 16 << 20)))

    cost = pl.CostEstimate(
        flops=int(B * hw_pad * (4 * C + 4)),
        transcendentals=int(B * hw_pad * (C + 1)),
        bytes_accessed=int(B * C * hw_pad * itemsize + B * hw_pad * (4 + itemsize)),
    )

    depth, conf = pl.pallas_call(
        _soft_weight_kernel,
        out_shape=(
            jax.ShapeDtypeStruct((B, 1, r_pad, _LANES), jnp.float32),
            jax.ShapeDtypeStruct((B, 1, r_pad, _LANES), in_dtype),
        ),
        grid_spec=pltpu.PrefetchScalarGridSpec(
            num_scalar_prefetch=0,
            grid=grid,
            in_specs=[
                pl.BlockSpec(memory_space=pltpu.MemorySpace.SMEM),            # bins (C,)
                pl.BlockSpec((1, C, rt, _LANES), lambda b, r: (b, 0, r, 0)),  # logits
            ],
            out_specs=[
                pl.BlockSpec((1, 1, rt, _LANES), lambda b, r: (b, 0, r, 0)),  # depth
                pl.BlockSpec((1, 1, rt, _LANES), lambda b, r: (b, 0, r, 0)),  # confidence
            ],
        ),
        compiler_params=pltpu.CompilerParams(
            dimension_semantics=("parallel", "parallel"),
            vmem_limit_bytes=vmem_limit,
        ),
        cost_estimate=cost,
    )(bins, x)

    depth = depth.reshape(B, 1, hw_pad)[..., :HW].reshape(B, 1, H, W)
    conf = conf.reshape(B, 1, hw_pad)[..., :HW].reshape(B, 1, H, W)
    return depth, conf


# ----------------------------------------------------------------------------
# Pure-JAX reference (mirrors the PyTorch forward)
# ----------------------------------------------------------------------------
def _reference(pred_logit, depth_bins_border):
    score = jax.nn.softmax(pred_logit.astype(jnp.float32), axis=1)   # [B,C,H,W]
    score_ch = jnp.transpose(score, (0, 2, 3, 1))                    # [B,H,W,C]
    depth_log = jnp.sum(score_ch * depth_bins_border, axis=3, keepdims=True)
    depth = 10.0 ** depth_log                                        # [B,H,W,1]
    depth = jnp.transpose(depth, (0, 3, 1, 2))                       # [B,1,H,W]
    conf = jnp.max(pred_logit, axis=1, keepdims=True)                # [B,1,H,W]
    return depth, conf


if __name__ == "__main__":
    key = jax.random.PRNGKey(0)
    B, C, H, W = 2, 4, 16, 16
    pred_logit = jax.random.normal(key, (B, C, H, W), dtype=jnp.float32)
    # Deterministic synthetic depth-bin borders (log10-depth bins), length C.
    depth_bins_border = jnp.linspace(-0.3, 1.0, C, dtype=jnp.float32)

    depth, conf = soft_weight(pred_logit, depth_bins_border)
    depth = jax.block_until_ready(depth)
    conf = jax.block_until_ready(conf)

    depth_ref, conf_ref = _reference(pred_logit, depth_bins_border)
    assert depth.shape == (B, 1, H, W) and conf.shape == (B, 1, H, W)
    assert depth.dtype == jnp.float32 and conf.dtype == pred_logit.dtype
    assert jnp.allclose(depth, depth_ref, rtol=2e-5, atol=2e-5)
    assert jnp.allclose(conf, conf_ref, rtol=1e-6, atol=1e-6)

    print("KERNEL_OK")
</pallas_src>

<mosaic_0001>
module attributes {stable_mosaic.version = 11 : i64} {
  func.func @_soft_weight_kernel(%arg0: i32, %arg1: i32, %arg2: memref<4xf32, #tpu.memory_space<smem>>, %arg3: memref<1x4x2x128xf32, #tpu.memory_space<vmem>>, %arg4: memref<1x1x2x128xf32, #tpu.memory_space<vmem>>, %arg5: memref<1x1x2x128xf32, #tpu.memory_space<vmem>>) attributes {dimension_semantics = [#tpu.dimension_semantics<parallel>, #tpu.dimension_semantics<parallel>], iteration_bounds = array<i64: 2, 1>, scalar_prefetch = 0 : i64, scratch_operands = 0 : i64, tpu.core_type = #tpu.core_type<tc>, window_params = [{transform_indices = @transform_0, window_bounds = array<i64: 4>}, {transform_indices = @transform_1, window_bounds = array<i64: 1, 4, 2, 128>}, {transform_indices = @transform_2, window_bounds = array<i64: 1, 1, 2, 128>}, {transform_indices = @transform_3, window_bounds = array<i64: 1, 1, 2, 128>}]} {
    %c0 = arith.constant 0 : index
    %c0_0 = arith.constant 0 : index
    %c0_1 = arith.constant 0 : index
    %c0_2 = arith.constant 0 : index
    %0 = vector.load %arg3[%c0, %c0_0, %c0_1, %c0_2] : memref<1x4x2x128xf32, #tpu.memory_space<vmem>>, vector<1x1x2x128xf32>
    %1 = vector.shape_cast %0 : vector<1x1x2x128xf32> to vector<2x128xf32>
    %c0_3 = arith.constant 0 : index
    %c1 = arith.constant 1 : index
    %c0_4 = arith.constant 0 : index
    %c0_5 = arith.constant 0 : index
    %2 = vector.load %arg3[%c0_3, %c1, %c0_4, %c0_5] : memref<1x4x2x128xf32, #tpu.memory_space<vmem>>, vector<1x1x2x128xf32>
    %3 = vector.shape_cast %2 : vector<1x1x2x128xf32> to vector<2x128xf32>
    %4 = arith.maximumf %1, %3 : vector<2x128xf32>
    %c0_6 = arith.constant 0 : index
    %c2 = arith.constant 2 : index
    %c0_7 = arith.constant 0 : index
    %c0_8 = arith.constant 0 : index
    %5 = vector.load %arg3[%c0_6, %c2, %c0_7, %c0_8] : memref<1x4x2x128xf32, #tpu.memory_space<vmem>>, vector<1x1x2x128xf32>
    %6 = vector.shape_cast %5 : vector<1x1x2x128xf32> to vector<2x128xf32>
    %7 = arith.maximumf %4, %6 : vector<2x128xf32>
    %c0_9 = arith.constant 0 : index
    %c3 = arith.constant 3 : index
    %c0_10 = arith.constant 0 : index
    %c0_11 = arith.constant 0 : index
    %8 = vector.load %arg3[%c0_9, %c3, %c0_10, %c0_11] : memref<1x4x2x128xf32, #tpu.memory_space<vmem>>, vector<1x1x2x128xf32>
    %9 = vector.shape_cast %8 : vector<1x1x2x128xf32> to vector<2x128xf32>
    %10 = arith.maximumf %7, %9 : vector<2x128xf32>
    %11 = vector.shape_cast %10 : vector<2x128xf32> to vector<1x1x2x128xf32>
    %c0_12 = arith.constant 0 : index
    %c0_13 = arith.constant 0 : index
    %c0_14 = arith.constant 0 : index
    %c0_15 = arith.constant 0 : index
    %12 = vector.load %arg5[%c0_12, %c0_13, %c0_14, %c0_15] : memref<1x1x2x128xf32, #tpu.memory_space<vmem>>, vector<1x1x2x128xf32>
    tpu.vector_store %arg5[%c0_12, %c0_13, %c0_14, %c0_15], %11 {strides = array<i32>} : memref<1x1x2x128xf32, #tpu.memory_space<vmem>>, vector<1x1x2x128xf32>,
    %c0_16 = arith.constant 0 : index
    %c0_17 = arith.constant 0 : index
    %c0_18 = arith.constant 0 : index
    %c0_19 = arith.constant 0 : index
    %13 = vector.load %arg3[%c0_16, %c0_17, %c0_18, %c0_19] : memref<1x4x2x128xf32, #tpu.memory_space<vmem>>, vector<1x1x2x128xf32>
    %14 = vector.shape_cast %13 : vector<1x1x2x128xf32> to vector<2x128xf32>
    %15 = arith.subf %14, %10 : vector<2x128xf32>
    %16 = math.exp %15 : vector<2x128xf32>
    %c0_20 = arith.constant 0 : index
    %17 = memref.load %arg2[%c0_20] : memref<4xf32, #tpu.memory_space<smem>>
    %18 = vector.broadcast %17 : f32 to vector<2x128xf32>
    %19 = arith.mulf %16, %18 : vector<2x128xf32>
    %c0_21 = arith.constant 0 : index
    %c1_22 = arith.constant 1 : index
    %c0_23 = arith.constant 0 : index
    %c0_24 = arith.constant 0 : index
    %20 = vector.load %arg3[%c0_21, %c1_22, %c0_23, %c0_24] : memref<1x4x2x128xf32, #tpu.memory_space<vmem>>, vector<1x1x2x128xf32>
    %21 = vector.shape_cast %20 : vector<1x1x2x128xf32> to vector<2x128xf32>
    %22 = arith.subf %21, %10 : vector<2x128xf32>
    %23 = math.exp %22 : vector<2x128xf32>
    %24 = arith.addf %16, %23 : vector<2x128xf32>
    %c1_25 = arith.constant 1 : index
    %25 = memref.load %arg2[%c1_25] : memref<4xf32, #tpu.memory_space<smem>>
    %26 = vector.broadcast %25 : f32 to vector<2x128xf32>
    %27 = arith.mulf %23, %26 : vector<2x128xf32>
    %28 = arith.addf %19, %27 : vector<2x128xf32>
    %c0_26 = arith.constant 0 : index
    %c2_27 = arith.constant 2 : index
    %c0_28 = arith.constant 0 : index
    %c0_29 = arith.constant 0 : index
    %29 = vector.load %arg3[%c0_26, %c2_27, %c0_28, %c0_29] : memref<1x4x2x128xf32, #tpu.memory_space<vmem>>, vector<1x1x2x128xf32>
    %30 = vector.shape_cast %29 : vector<1x1x2x128xf32> to vector<2x128xf32>
    %31 = arith.subf %30, %10 : vector<2x128xf32>
    %32 = math.exp %31 : vector<2x128xf32>
    %33 = arith.addf %24, %32 : vector<2x128xf32>
    %c2_30 = arith.constant 2 : index
    %34 = memref.load %arg2[%c2_30] : memref<4xf32, #tpu.memory_space<smem>>
    %35 = vector.broadcast %34 : f32 to vector<2x128xf32>
    %36 = arith.mulf %32, %35 : vector<2x128xf32>
    %37 = arith.addf %28, %36 : vector<2x128xf32>
    %c0_31 = arith.constant 0 : index
    %c3_32 = arith.constant 3 : index
    %c0_33 = arith.constant 0 : index
    %c0_34 = arith.constant 0 : index
    %38 = vector.load %arg3[%c0_31, %c3_32, %c0_33, %c0_34] : memref<1x4x2x128xf32, #tpu.memory_space<vmem>>, vector<1x1x2x128xf32>
    %39 = vector.shape_cast %38 : vector<1x1x2x128xf32> to vector<2x128xf32>
    %40 = arith.subf %39, %10 : vector<2x128xf32>
    %41 = math.exp %40 : vector<2x128xf32>
    %42 = arith.addf %33, %41 : vector<2x128xf32>
    %c3_35 = arith.constant 3 : index
    %43 = memref.load %arg2[%c3_35] : memref<4xf32, #tpu.memory_space<smem>>
    %44 = vector.broadcast %43 : f32 to vector<2x128xf32>
    %45 = arith.mulf %41, %44 : vector<2x128xf32>
    %46 = arith.addf %37, %45 : vector<2x128xf32>
    %47 = arith.divf %46, %42 : vector<2x128xf32>
    %cst = arith.constant 2.30258512 : f32
    %48 = vector.broadcast %cst : f32 to vector<2x128xf32>
    %49 = arith.mulf %47, %48 : vector<2x128xf32>
    %50 = math.exp %49 : vector<2x128xf32>
    %51 = vector.shape_cast %50 : vector<2x128xf32> to vector<1x1x2x128xf32>
    %c0_36 = arith.constant 0 : index
    %c0_37 = arith.constant 0 : index
    %c0_38 = arith.constant 0 : index
    %c0_39 = arith.constant 0 : index
    %52 = vector.load %arg4[%c0_36, %c0_37, %c0_38, %c0_39] : memref<1x1x2x128xf32, #tpu.memory_space<vmem>>, vector<1x1x2x128xf32>
    tpu.vector_store %arg4[%c0_36, %c0_37, %c0_38, %c0_39], %51 {strides = array<i32>} : memref<1x1x2x128xf32, #tpu.memory_space<vmem>>, vector<1x1x2x128xf32>,
    return
  }
  func.func @transform_0(%arg0: i32, %arg1: i32) -> i32 {
    %c0_i32 = arith.constant 0 : i32
    %c0_i32_0 = arith.constant 0 : i32
    return %c0_i32 : i32
  }
  func.func @transform_1(%arg0: i32, %arg1: i32) -> (i32, i32, i32, i32) {
    %c0_i32 = arith.constant 0 : i32
    %c0_i32_0 = arith.constant 0 : i32
    %c0_i32_1 = arith.constant 0 : i32
    return %arg0, %c0_i32, %arg1, %c0_i32_0 : i32, i32, i32, i32
  }
  func.func @transform_2(%arg0: i32, %arg1: i32) -> (i32, i32, i32, i32) {
    %c0_i32 = arith.constant 0 : i32
    %c0_i32_0 = arith.constant 0 : i32
    %c0_i32_1 = arith.constant 0 : i32
    return %arg0, %c0_i32, %arg1, %c0_i32_0 : i32, i32, i32, i32
  }
  func.func @transform_3(%arg0: i32, %arg1: i32) -> (i32, i32, i32, i32) {
    %c0_i32 = arith.constant 0 : i32
    %c0_i32_0 = arith.constant 0 : i32
    %c0_i32_1 = arith.constant 0 : i32
    return %arg0, %c0_i32, %arg1, %c0_i32_0 : i32, i32, i32, i32
  }
}

</mosaic_0001>

<bundles_post_ra>
// kernel: tpu_custom_call.1
= control target key start
LH: loop header
LB: loop body
LE: loop exit
PB: predicated region body
PF: predicated region fallthrough
CT: control target
= control target key end

     0   :  { %s946_s0 = inlined_call_operand.hbm [shape: f32[4], index: 0, kind: input, shape index: {}]   ;;  %s947_s1 = inlined_call_operand.hbm [shape: f32[2,4,2,128], index: 1, kind: input, shape index: {}]   ;;  %s948_s2 = inlined_call_operand.hbm [shape: f32[2,1,2,128], index: 2, kind: output, shape index: {0}]   ;;  %s949_s3 = inlined_call_operand.hbm [shape: f32[2,1,2,128], index: 3, kind: output, shape index: {1}]  }
   0x1   :  { %950 = sst [smem:[#allocation14_spill]] %s946_s0 }
   0x2   :  { %9 = vsyncpa [#allocation5], 0 }
   0x3   :  { %10 = vsyncpa [#allocation3], 0 }
   0x4   :  { %12 = vsyncpa [#allocation3 + $0x1], 0 }
   0x5   :  { %13 = vsyncpa [#allocation4], 0 }
   0x6   :  { %15 = vsyncpa [#allocation4 + $0x1], 0 }
   0x7   :  { %16 = vsyncpa [#allocation9], 0 }
   0x8   :  { %18 = vsyncpa [#allocation9 + $0x1], 0  ;;  %s772_s12 = smov 0   ;;  %s774_s13 = smov 0  }
   0x9   :  { %s776_s14 = smov 0   ;;  %s778_s15 = smov 0  }
   0xa   :  { %s780_s16 = smov 0   ;;  %s782_s17 = smov 0  }
   0xb LB: > { %s463_s18 = sadd.s32 4294967295, %s747_s17   ;;  %s464_s19 = sadd.s32 4294967294, %s747_s17   ;;  %s747_s17 = sphi %s782_s17, %s24_s17   ;;  %s743_s16 = sphi %s780_s16, %s963_s16   ;;  %s739_s15 = sphi %s778_s15, %s962_s15   ;;  %s735_s14 = sphi %s776_s14, %s961_s14   ;;  %s731_s13 = sphi %s774_s13, %s960_s13   ;;  %s727_s12 = sphi %s772_s12, %s959_s12  }
   0xc   : > { %s66_s20 = sadd.s32 1, %s735_s14  ;;  %p73_p0 = scmp.ne.s32.totalorder %s735_s14, %s731_s13 }
   0xd   : > { %p74_p1 = scmp.eq.s32.totalorder %s747_s17, 0  ;;  %p79_p2 = scmp.ne.s32.totalorder %s731_s13, %s727_s12 }
   0xe   : > { %p810_p3 = scmp.eq.s32.totalorder %s463_s18, 0  ;;  %p105_p4 = scmp.eq.s32.totalorder %s463_s18, 1 }
   0xf   : > { %p814_p5 = por %p74_p1, %p73_p0  ;;  %p111_p6 = scmp.eq.s32.totalorder %s464_s19, 1 }
  0x10   : > { %p820_p7 = por %p810_p3, %p79_p2  ;;  %p824_p8 = por %p105_p4, %p73_p0 }
  0x11   : > { %p828_p9 = por %p111_p6, %p79_p2  ;;  %p465_p10 = scmp.ge.s32.totalorder %s747_s17, 1 }
  0x12   : > { %p146_p11 = scmp.lt.s32.totalorder %s747_s17, 3  ;;  %s956_s0 = sld [smem:[#allocation14_spill]] }
  0x13   : > { %p467_p13 = scmp.ge.s32.totalorder %s747_s17, 2  ;;  %p518_p0 = scmp.lt.s32.totalorder %s747_s17, 2 }
  0x14   : > { %p837_p12 = pnand %p465_p10, %p146_p11  ;;  %s36_s4 = sadd.s32 1, %s743_s16 }
  0x15   : > { %p847_p2 = pnand %p518_p0, %p814_p5  ;;  %p38_p6 = scmp.ge.s32.totalorder %s36_s4, 2 }
  0x16   : > { %p502_p1 = pneg %p837_p12  ;;  %s169_s5 = sand.u32 1, %s735_s14  }
  0x17   : > { %s749_s6 = smov [#allocation2]   ;;  %s965_s4 = smov (%p38_p6, %s36_s4), 0 }
  0x18   : > { %s158_s28 = sshll.u32 %s956_s0, 4  ;;  %p503_p4 = pnand %p502_p1, %p810_p3  ;;  %s159_s28 = int_to_ptr.hbm [resolvable:$true] %s158_s28 }
  0x19   : > { %s468_s7 = sshll.u32 %s169_s5, 3  ;;  %s61_s8 = ssub.s32 %s743_s16, %s965_s4 }
  0x1a   : > { %505 = dma.hbm_to_smem (!%p503_p4), %s159_s28, 16, %s749_s6, [#allocation5]  }
  0x1b   : > { %p64_p10 = scmp.eq.s32.totalorder %s61_s8, 0  ;;  %s491_s9 = sshll.u32 %s743_s16, 3 }
  0x1c   : > { %s179_s18 = scalar_lea.hbm %s947_s1, %s491_s9  ;;  %s173_s19 = scalar_lea.vmem [#allocation6], %s468_s7 }
  0x1d   : > { %s182_s22 = sshll.u32 %s173_s19, 4  ;;  %s180_s27 = sshll.u32 %s179_s18, 4  ;;  %s183_s22 = int_to_ptr.vmem [resolvable:$true] %s182_s22  ;;  %s181_s27 = int_to_ptr.hbm [resolvable:$true] %s180_s27 }
  0x1e   : > { %s866_s26 = scalar_select %p64_p10, %s735_s14, %s66_s20  }
  0x1f   : > { %s170_s28 = scalar_lea.sflag [#allocation3], %s169_s5  ;;  %s750_s6 = smov 32  }
  0x20   : > { %s751_s0 = smov 2   ;;  %194 = sbr.rel (%p837_p12) target bundleno = 105 (0x69), region = 28 }
  0x21   : > { %509 = dma.hbm_to_vmem [thread:$0]  (!%p847_p2), %s181_s27, 128, %s183_s22, %s170_s28, %s750_s6, %s750_s6, %s751_s0  }
  0x25   : > { %710 = dma.done.wait (%p810_p3), [#allocation5], 16  }
  0x26   : > { %712 = vsyncadd (%p810_p3), [#allocation5], 4294967280  ;;  %s877_s20 = sand.u32 1, %s731_s13  }
  0x27   : > { %s473_s5 = sshll.u32 %s877_s20, 3  ;;  %s202_s7 = scalar_lea.sflag [#allocation3], %s877_s20 }
  0x28   : > { %s205_s8 = scalar_lea.vmem [#allocation6], %s473_s5 }
  0x29   : > { %714 = dma.done.wait (%p820_p7), %s202_s7, 128  }
  0x2a   : > { %716 = vsyncadd (%p820_p7), %s202_s7, 4294967168 }
  0x2b   : > { %211 = sfence }
  0x2c   : > { %s474_s0 = sshll.u32 %s877_s20, 1  ;;  %v235_v0 = vld [vmem:[%s205_s8] sm:$0x3]  ;;  %v476_v1 = vld [vmem:[%s205_s8 + $0x2] sm:$0x3]  ;;  %s487_s23 = sshll.u32 %s739_s15, 1 }
  0x2d   : > { %v238_v2 = vmax.f32 %v235_v0, %v476_v1  ;;  %v477_v3 = vld [vmem:[%s205_s8 + $0x4] sm:$0x3]  ;;  %v478_v4 = vld [vmem:[%s205_s8 + $0x6] sm:$0x3]  ;;  %s234_s21 = scalar_lea.vmem [#allocation8], %s474_s0  ;;  %s331_s10 = scalar_lea.hbm %s949_s3, %s487_s23 }
  0x2e   : > { %s333_s29 = sshll.u32 %s234_s21, 4  ;;  %v246_v6 = vld [vmem:[%s205_s8] sm:$0x3]  ;;  %v479_v7 = vld [vmem:[%s205_s8 + $0x2] sm:$0x3]  ;;  %s335_s11 = sshll.u32 %s331_s10, 4  ;;  %s334_s29 = int_to_ptr.vmem [resolvable:$true] %s333_s29  ;;  %s336_s11 = int_to_ptr.hbm [resolvable:$true] %s335_s11 }
  0x2f   : > { %v241_v5 = vmax.f32 %v238_v2, %v477_v3  ;;  %v481_v8 = vld [vmem:[%s205_s8 + $0x4] sm:$0x3]  ;;  %v483_v9 = vld [vmem:[%s205_s8 + $0x6] sm:$0x3]  ;;  %s305_s18 = scalar_lea.sflag [#allocation9], %s877_s20  ;;  %s643_s19 = sshra.s32 %s336_s11, 4  ;;  %s644_s19 = int_to_ptr.hbm [resolvable:$true] %s643_s19 }
  0x30   : > { %s645_s22 = scalar_lea.hbm %s644_s19, 2  ;;  %s649_s6 = scalar_lea.hbm %s949_s3, 4 }
  0x31   : > { %v244_v10 = vmax.f32 %v241_v5, %v478_v4  ;;  %p646_p3 = scmp.ne.s32.totalorder %s644_s19, %s645_s22  ;;  %p650_p11 = scmp.lt.s32.totalorder %s644_s19, %s949_s3 }
  0x32   : > { %p651_p12 = scmp.lt.s32.totalorder %s649_s6, %s645_s22 }
  0x33   : > { %245 = vst [vmem:[%s234_s21] sm:$0x3] %v244_v10  ;;  %v247_v11 = vsub.f32 %v246_v6, %v244_v10  ;;  %v254_v12 = vsub.f32 %v479_v7, %v244_v10  ;;  %v263_v13 = vsub.f32 %v481_v8, %v244_v10  ;;  %v272_v14 = vsub.f32 %v483_v9, %v244_v10  ;;  %p647_p5 = pnand %p646_p3, %p824_p8 }
  0x34   : > { %p652_p0 = por %p651_p12, %p650_p11 }
  0x35   : > { %v248_v15 = vmul.f32 1.442695, %v247_v11  ;;  %v255_v16 = vmul.f32 1.442695, %v254_v12  ;;  %v264_v17 = vmul.f32 1.442695, %v263_v13  ;;  %p648_p7 = pneg %p647_p5 }
  0x36   : > { %v273_v18 = vmul.f32 1.442695, %v272_v14 }
  0x37   : > { %p653_p1 = pnand %p652_p0, %p648_p7 }
  0x39   : > { %656 = shalt.err (!%p653_p1)
}
  0x3a   : > { %499 = dma.vmem_to_hbm [thread:$0]  (%p824_p8), %s334_s29, 32, %s336_s11, %s305_s18   ;;  %572 = vpow2.f32 %v248_v15 }
  0x3b   : > { %574 = vpow2.f32 %v255_v16  ;;  %s250_s8 = sld [smem:[#allocation2]]  ;;  %s316_s11 = scalar_lea.hbm %s948_s2, %s487_s23 }
  0x3c   : > { %576 = vpow2.f32 %v264_v17  ;;  %s480_s21 = sld [smem:[#allocation2 + $0x1]]  ;;  %s227_s18 = scalar_lea.vmem [#allocation7], %s474_s0 }
  0x3d   : > { %578 = vpow2.f32 %v273_v18  ;;  %s482_s30 = sld [smem:[#allocation2 + $0x2]]  ;;  %s318_s19 = sshll.u32 %s227_s18, 4  ;;  %s319_s19 = int_to_ptr.vmem [resolvable:$true] %s318_s19 }
  0x3e   : > { %s484_s9 = sld [smem:[#allocation2 + $0x3]]  ;;  %s320_s22 = sshll.u32 %s316_s11, 4  ;;  %s321_s22 = int_to_ptr.hbm [resolvable:$true] %s320_s22 }
  0x3f   : > { %s300_s27 = scalar_lea.sflag [#allocation4], %s877_s20  ;;  %s671_s28 = sshra.s32 %s321_s22, 4  ;;  %s672_s28 = int_to_ptr.hbm [resolvable:$true] %s671_s28 }
  0x40   : > { %v573_v19 = vpop.eup %572  ;;  %s673_s6 = scalar_lea.hbm %s672_s28, 2  ;;  %s677_s23 = scalar_lea.hbm %s948_s2, 4 }
  0x41   : > { %v575_v20 = vpop.eup %574  ;;  %v251_v25 = vstv %s250_s8  ;;  %p674_p2 = scmp.ne.s32.totalorder %s672_s28, %s673_s6  ;;  %p678_p10 = scmp.lt.s32.totalorder %s672_s28, %s948_s2 }
  0x42   : > { %v577_v21 = vpop.eup %576  ;;  %v257_v22 = vadd.f32 %v575_v20, %v573_v19  ;;  %v259_v26 = vstv %s480_s21  ;;  %v252_v28 = vmul.f32 %v573_v19, %v251_v25  ;;  %p679_p3 = scmp.lt.s32.totalorder %s677_s23, %s673_s6 }
  0x43   : > { %v579_v23 = vpop.eup %578  ;;  %v260_v29 = vmul.f32 %v575_v20, %v259_v26  ;;  %v268_v30 = vstv %s482_s30  ;;  %p675_p4 = pnand %p674_p2, %p824_p8 }
  0x44   : > { %v266_v24 = vadd.f32 %v577_v21, %v257_v22  ;;  %v269_v32 = vmul.f32 %v577_v21, %v268_v30  ;;  %v277_v33 = vstv %s484_s9  ;;  %p680_p5 = por %p679_p3, %p678_p10 }
  0x45   : > { %v261_v31 = vadd.f32 %v260_v29, %v252_v28  ;;  %v278_v37 = vmul.f32 %v579_v23, %v277_v33  ;;  %p676_p6 = pneg %p675_p4 }
  0x46   : > { %v275_v27 = vadd.f32 %v579_v23, %v266_v24 }
  0x47   : > { %v270_v36 = vadd.f32 %v269_v32, %v261_v31  ;;  %p681_p7 = pnand %p680_p5, %p676_p6 }
  0x48   : > { %580 = vrcp.f32 %v275_v27  ;;  %v291_v38 = vand.u32 2147483648, %v275_v27  ;;  %vm285_vm0 = vweird.f32 %v275_v27  ;;  %v289_v40 = vand.u32 2147483647, %v275_v27 }
  0x49   : > { %v279_v43 = vadd.f32 %v278_v37, %v270_v36 }
  0x4a   : > { %v292_v42 = vor.u32 1.1754944e-38, %v291_v38  ;;  %vm290_vm3 = vcmp.eq.f32.partialorder %v289_v40, 8.507059e+37 }
  0x4e   : > { %v581_v34 = vpop.eup %580 }
  0x4f   : > { %v281_v35 = vmul.f32 %v581_v34, %v275_v27  ;;  %vm286_vm1 = vweird.f32 %v581_v34 }
  0x50   : > { %vm287_vm2 = vmor %vm285_vm0, %vm286_vm1 }
  0x51   : > { %v282_v39 = vsub.f32 1.0, %v281_v35 }
  0x53   : > { %v283_v41 = vmul.f32 %v581_v34, %v282_v39 }
  0x55   : > { %v284_v44 = vadd.f32 %v581_v34, %v283_v41 }
  0x57   : > { %v288_v45 = vsel %vm287_vm2, %v581_v34, %v284_v44 }
  0x58   : > { %v293_v46 = vsel %vm290_vm3, %v292_v42, %v288_v45 }
  0x59   : > { %v294_v47 = vmul.f32 %v293_v46, %v279_v43 }
  0x5b   : > { %v295_v48 = vmul.f32 2.3025851, %v294_v47 }
  0x5d   : > { %v296_v49 = vmul.f32 1.442695, %v295_v48 }
  0x5f   : > { %582 = vpow2.f32 %v296_v49 }
  0x65   : > { %v583_v50 = vpop.eup %582 }
  0x66   : > { %298 = vst [vmem:[%s227_s18] sm:$0x3] %v583_v50 }
  0x67   : > { %684 = shalt.err (!%p681_p7)
}
  0x68   : > { %498 = dma.vmem_to_hbm [thread:$0]  (%p824_p8), %s319_s19, 32, %s321_s22, %s300_s27  }
  0x69 PF: > { %s347_s20 = sand.u32 1, %s727_s12   ;;  %p511_p11 = pnand %p467_p13, %p828_p9 }
  0x6a   : > { %s348_s8 = scalar_lea.sflag [#allocation4], %s347_s20 }
  0x6b   : > { %p512_p12 = pneg %p511_p11 }
  0x6d   : > { %718 = dma.done.wait (%p512_p12), %s348_s8, 32  }
  0x6e   : > { %720 = vsyncadd (%p512_p12), %s348_s8, 4294967264  ;;  %s358_s21 = scalar_lea.sflag [#allocation9], %s347_s20 }
  0x6f   : > { %722 = dma.done.wait (%p512_p12), %s358_s21, 32  }
  0x70   : > { %724 = vsyncadd (%p512_p12), %s358_s21, 4294967264  ;;  %s24_s17 = sadd.s32 1, %s747_s17   ;;  %s959_s12 = smov %s731_s13 }
  0x71   : > { %p21_p0 = scmp.ge.s32.totalorder %s24_s17, 4   ;;  %s960_s13 = smov %s735_s14 }
  0x72   : > { %s961_s14 = smov %s866_s26  ;;  %s962_s15 = smov %s743_s16 }
  0x73   : > { %s963_s16 = smov %s965_s4  ;;  %23 = sbr.rel (!%p21_p0) target bundleno = 11 (0xb), region = 98 }
  0x78   :  { %364 = vsyncpa [#allocation3], 1 }
  0x79   :  { %366 = vsyncpa [#allocation3 + $0x1], 1 }
  0x7a   :  { %367 = vsyncpa [#allocation4], 1 }
  0x7b   :  { %369 = vsyncpa [#allocation4 + $0x1], 1 }
  0x7c   :  { %370 = vsyncpa [#allocation9], 1 }
  0x7d   :  { %372 = vsyncpa [#allocation9 + $0x1], 1 }
  0x7e   :  { %373 = vsyncpa [#allocation5], 1 }
  0x7f   :  { %375 = vsyncpa [#allocation5 + $0x1], 1 }

</bundles_post_ra>
